<compile_context>
chip_gen: v6e
topology: v6e:2x2x1
jax: 0.10.0
libtpu: 0.0.40
codegen_flags: <defaults>
</compile_context>

<pallas_src>
import functools

import jax
import jax.numpy as jnp
from jax import lax
from jax.experimental import pallas as pl
from jax.experimental.pallas import tpu as pltpu

TEMPERATURE = 1.0        # only feeds the mathematically-zero NLL branch
SOFTPLUS_W = 10000.0
COS_EPS = 1e-8           # used by the faithful reference only

_CHUNK_TARGET_BYTES = 1 << 20      # f32 bytes processed per in-kernel row chunk


# --------------------------------------------------------------------------------------
# Generation-aware tuning.
# --------------------------------------------------------------------------------------
@functools.lru_cache(maxsize=None)
def _vmem_capacity_bytes():
    try:
        cap = getattr(pltpu.get_tpu_info(), "vmem_capacity_bytes", None)
        if cap:
            return int(cap)
    except Exception:
        pass
    try:
        kind = jax.devices()[0].device_kind.lower()
        if any(v in kind for v in ("v4", "v5", "v6")):
            return 128 << 20
    except Exception:
        pass
    return 64 << 20   # conservative default (v7x-sized VMEM)


@functools.lru_cache(maxsize=None)
def _tuning():
    cap = _vmem_capacity_bytes()
    small_vmem = cap < (100 << 20)                       # v7x: 64 MiB per TC
    single_max = (12 << 20) if small_vmem else (24 << 20)
    tile_target = (8 << 20) if small_vmem else (4 << 20)  # bigger tiles on v7x (3.2 TB/s)
    vmem_limit = min((48 << 20) if small_vmem else (64 << 20),
                     max(cap - (16 << 20), 16 << 20))
    return single_max, tile_target, vmem_limit


def _pick_chunk_rows(n_cols):
    rows = _CHUNK_TARGET_BYTES // max(n_cols * 4, 1)
    if rows >= 16:
        return (rows // 16) * 16      # 16-row alignment also serves bf16 sublane packing
    return 8


# --------------------------------------------------------------------------------------
# Chunked row-range reduction over a VMEM ref: keeps live f32 temporaries ~O(chunk).
# --------------------------------------------------------------------------------------
def _chunked_reduce(x_ref, rows, chunk_rows, fn):
    """sum_{chunks of x_ref[0:rows, :]} fn(chunk_f32) ; fn returns a (1,1) f32."""
    acc = jnp.zeros((1, 1), jnp.float32)
    if rows <= 0:
        return acc
    if rows <= chunk_rows:
        return acc + fn(x_ref[0:rows, :].astype(jnp.float32))

    n_full = rows // chunk_rows
    rem = rows - n_full * chunk_rows

    def body(ci, a):
        r0 = pl.multiple_of(ci * chunk_rows, chunk_rows)
        xc = x_ref[pl.ds(r0, chunk_rows), :].astype(jnp.float32)
        return a + fn(xc)

    acc = lax.fori_loop(0, n_full, body, acc)
    if rem > 0:
        acc = acc + fn(x_ref[n_full * chunk_rows:rows, :].astype(jnp.float32))
    return acc


# --------------------------------------------------------------------------------------
# Single-block kernel: whole matrix resident in VMEM (gridless call, 1x HBM read).
# --------------------------------------------------------------------------------------
def _tcl_single_kernel(x_ref, o_ref, *, total_t, total_n, chunk_rows):
    count = float(total_t * total_n)

    s = _chunked_reduce(x_ref, total_t, chunk_rows,
                        lambda xc: jnp.sum(xc, keepdims=True))             # (1,1)
    mean = s / count
    q = _chunked_reduce(x_ref, total_t, chunk_rows,
                        lambda xc: jnp.sum((xc - mean) ** 2, keepdims=True))
    var = q / (count - 1.0)                                                # unbiased
    c = -0.5 / var                                                         # folded scalar

    sgw = _chunked_reduce(
        x_ref, total_t, chunk_rows,
        lambda xc: jnp.sum(jnp.exp((xc - mean) ** 2 * c), keepdims=True))
    inv_s = 1.0 / sgw

    # Only row T-1 is ever used; recompute its Gaussian weight from the ref row.
    x_i = x_ref[total_t - 1:total_t, :].astype(jnp.float32)                # (1, N)
    d_i = x_i - mean
    w_i = jnp.exp(d_i * d_i * c) * inv_s
    lw = jnp.log(w_i)
    loss_i = float(total_t - 1) * jnp.sum(w_i * w_i * lw, keepdims=True)   # (1, 1)
    o_ref[...] = loss_i + jnp.log(1.0 + jnp.exp(SOFTPLUS_W * loss_i))


def _single_block_call(x, vmem_limit):
    t_dim, n_dim = x.shape
    kernel = functools.partial(_tcl_single_kernel, total_t=t_dim, total_n=n_dim,
                               chunk_rows=_pick_chunk_rows(n_dim))
    out = pl.pallas_call(
        kernel,
        out_shape=jax.ShapeDtypeStruct((1, 1), jnp.float32),
        in_specs=[pl.BlockSpec(memory_space=pltpu.MemorySpace.VMEM)],
        out_specs=pl.BlockSpec(memory_space=pltpu.MemorySpace.VMEM),
        compiler_params=pltpu.CompilerParams(vmem_limit_bytes=vmem_limit),
    )(x)
    return out[0, 0]


# --------------------------------------------------------------------------------------
# Tiled path: two parallel per-tile partial-reduction kernels + tiny JAX combine.
#   pass A: per-tile (sum, centered-sumsq) -> Chan-combined mean/var in JAX.
#   pass B: per-tile sum(gw)               -> global sum(gw) in JAX.
#   finalize (O(N), row T-1 only)          -> plain JAX.
# --------------------------------------------------------------------------------------
def _tcl_tile_moments_kernel(x_ref, sum_ref, q_ref, *,
                             tile_rows, rem_rows, n_tiles, total_n, chunk_rows):
    def emit(rows):
        cnt = float(rows * total_n)
        s = _chunked_reduce(x_ref, rows, chunk_rows,
                            lambda xc: jnp.sum(xc, keepdims=True))
        m = s / cnt
        q = _chunked_reduce(x_ref, rows, chunk_rows,
                            lambda xc: jnp.sum((xc - m) ** 2, keepdims=True))
        sum_ref[...] = jnp.broadcast_to(s, sum_ref.shape)
        q_ref[...] = jnp.broadcast_to(q, q_ref.shape)

    if rem_rows == tile_rows:
        emit(tile_rows)
    else:
        last = pl.program_id(0) == n_tiles - 1

        @pl.when(jnp.logical_not(last))
        def _full():
            emit(tile_rows)

        @pl.when(last)
        def _ragged():
            emit(rem_rows)


def _tcl_tile_gaussian_kernel(stats_ref, x_ref, gw_ref, *,
                              tile_rows, rem_rows, n_tiles, chunk_rows):
    stats = stats_ref[...]                 # (1, 2) = [mean, -0.5/var]
    mean = stats[0:1, 0:1]
    c = stats[0:1, 1:2]

    def emit(rows):
        sgw = _chunked_reduce(
            x_ref, rows, chunk_rows,
            lambda xc: jnp.sum(jnp.exp((xc - mean) ** 2 * c), keepdims=True))
        gw_ref[...] = jnp.broadcast_to(sgw, gw_ref.shape)

    if rem_rows == tile_rows:
        emit(tile_rows)
    else:
        last = pl.program_id(0) == n_tiles - 1

        @pl.when(jnp.logical_not(last))
        def _full():
            emit(tile_rows)

        @pl.when(last)
        def _ragged():
            emit(rem_rows)


def _tiled_call(x, tile_rows, vmem_limit):
    t_dim, n_dim = x.shape
    n_tiles = -(-t_dim // tile_rows)
    rem_rows = t_dim - (n_tiles - 1) * tile_rows
    chunk_rows = _pick_chunk_rows(n_dim)

    x_spec = pl.BlockSpec((tile_rows, n_dim), lambda t: (t, 0))
    part_shape = jax.ShapeDtypeStruct((n_tiles, 8, 128), jnp.float32)   # lane-dense partials
    part_spec = pl.BlockSpec((1, 8, 128), lambda t: (t, 0, 0))
    cparams = pltpu.CompilerParams(dimension_semantics=("parallel",),
                                   vmem_limit_bytes=vmem_limit)

    # ---- pass A: per-tile moments ----------------------------------------------------
    sums3, qs3 = pl.pallas_call(
        functools.partial(_tcl_tile_moments_kernel, tile_rows=tile_rows,
                          rem_rows=rem_rows, n_tiles=n_tiles, total_n=n_dim,
                          chunk_rows=chunk_rows),
        out_shape=(part_shape, part_shape),
        grid=(n_tiles,),
        in_specs=[x_spec],
        out_specs=(part_spec, part_spec),
        compiler_params=cparams,
    )(x)
    sums = sums3[:, 0, 0]
    qs = qs3[:, 0, 0]

    cnts = jnp.asarray([tile_rows * n_dim] * (n_tiles - 1) + [rem_rows * n_dim],
                       dtype=jnp.float32)
    total = float(t_dim * n_dim)
    gmean = jnp.sum(sums) / total
    tile_means = sums / cnts
    m2 = jnp.sum(qs + cnts * (tile_means - gmean) ** 2)        # Chan combine (exact)
    var = m2 / (total - 1.0)                                   # unbiased (torch.std)
    c = -0.5 / var
    stats = jnp.stack([gmean, c]).reshape(1, 2).astype(jnp.float32)

    # ---- pass B: per-tile sum of Gaussian weights -------------------------------------
    gwp = pl.pallas_call(
        functools.partial(_tcl_tile_gaussian_kernel, tile_rows=tile_rows,
                          rem_rows=rem_rows, n_tiles=n_tiles, chunk_rows=chunk_rows),
        out_shape=part_shape,
        grid=(n_tiles,),
        in_specs=[pl.BlockSpec((1, 2), lambda t: (0, 0)), x_spec],
        out_specs=part_spec,
        compiler_params=cparams,
    )(stats, x)
    s_gw = jnp.sum(gwp[:, 0, 0])

    # ---- finalize on row T-1 (O(N); negligible HBM traffic, plain JAX) ----------------
    x_last = x[t_dim - 1].astype(jnp.float32)
    d = x_last - gmean
    w_i = jnp.exp(d * d * c) / s_gw
    loss_i = float(t_dim - 1) * jnp.sum(w_i * w_i * jnp.log(w_i))
    return loss_i + jnp.log(1.0 + jnp.exp(SOFTPLUS_W * loss_i))


# --------------------------------------------------------------------------------------
# Public wrapper.
# --------------------------------------------------------------------------------------
def temporal_contrastive_loss(x, *, tile_rows=None):
    """x: (T, N) similarity matrix (f32 or bf16) -> scalar f32 loss."""
    if x.ndim != 2:
        raise ValueError("expected a 2-D temporal similarity matrix (frames, features)")
    t_dim, n_dim = x.shape
    single_max, tile_target, vmem_limit = _tuning()
    itemsize = jnp.dtype(x.dtype).itemsize
    nbytes = t_dim * n_dim * itemsize

    if tile_rows is None:
        if nbytes <= single_max:
            return _single_block_call(x, vmem_limit)
        align = {1: 32, 2: 16}.get(itemsize, 8)        # sublane packing per dtype
        tile_rows = max(align, (tile_target // max(n_dim * itemsize, 1)) // align * align)
    else:
        tile_rows = max(8, (int(tile_rows) // 8) * 8)

    if tile_rows >= t_dim:
        return _single_block_call(x, vmem_limit)
    return _tiled_call(x, tile_rows, vmem_limit)


# --------------------------------------------------------------------------------------
# Pure-JAX references.
# --------------------------------------------------------------------------------------
def _reference_faithful(x):
    """Mirrors the PyTorch module loop-for-loop (zero NLL branch kept)."""
    x = x.astype(jnp.float32)
    t_dim, n_dim = x.shape
    count = t_dim * n_dim
    loss = jnp.float32(0.0)
    for i in range(t_dim):
        mean = jnp.sum(x) / count
        var = jnp.sum((x - mean) ** 2) / (count - 1)
        gw = jnp.exp(-0.5 * (x - mean) ** 2 / var)
        w = gw / jnp.sum(gw)
        loss_i_vec = jnp.zeros((n_dim,), jnp.float32)
        for j in range(t_dim):
            if j == i:
                continue
            cos = jnp.dot(x[i], x[j]) / jnp.maximum(
                jnp.linalg.norm(x[i]) * jnp.linalg.norm(x[j]), COS_EPS)
            exp_sim = jnp.exp(cos / TEMPERATURE)
            nll = -jnp.log(exp_sim / jnp.sum(exp_sim))      # softmax of a scalar == 1
            loss_i_vec = loss_i_vec + w[i] * (jnp.log(w[i]) - nll)
        loss_i = jnp.sum(loss_i_vec * w[i])
        loss = loss_i + jnp.log(1.0 + jnp.exp(SOFTPLUS_W * loss_i))  # overwritten (as torch)
    return loss


def _reference_trimmed(x):
    """Algebraically simplified reference (NLL term is exactly zero)."""
    x = x.astype(jnp.float32)
    t_dim, n_dim = x.shape
    count = t_dim * n_dim
    mean = jnp.sum(x) / count
    var = jnp.sum((x - mean) ** 2) / (count - 1)
    gw = jnp.exp(-0.5 * (x - mean) ** 2 / var)
    w_i = gw[t_dim - 1] / jnp.sum(gw)
    loss_i = (t_dim - 1) * jnp.sum(w_i * w_i * jnp.log(w_i))
    return loss_i + jnp.log(1.0 + jnp.exp(SOFTPLUS_W * loss_i))


if __name__ == "__main__":
    key = jax.random.PRNGKey(0)
    k1, k2, k3, k4 = jax.random.split(key, 4)

    # --- small case: single-block path, checked against the faithful loop reference ----
    x_small = jax.random.normal(k1, (8, 16), dtype=jnp.float32)
    got_small = temporal_contrastive_loss(x_small)
    jax.block_until_ready(got_small)
    ref_full = _reference_faithful(x_small)
    ref_trim = _reference_trimmed(x_small)
    assert jnp.allclose(ref_full, ref_trim, rtol=1e-5, atol=1e-6), (ref_full, ref_trim)
    assert jnp.allclose(got_small, ref_full, rtol=1e-4, atol=1e-5), (got_small, ref_full)

    # --- bf16 input through the single-block path ---------------------------------------
    x_bf16 = jax.random.normal(k2, (64, 128), dtype=jnp.float32).astype(jnp.bfloat16)
    got_bf = temporal_contrastive_loss(x_bf16)
    jax.block_until_ready(got_bf)
    ref_bf = _reference_trimmed(x_bf16)
    assert jnp.allclose(got_bf, ref_bf, rtol=1e-3, atol=1e-4), (got_bf, ref_bf)

    # --- mid-size default dispatch: single-block path with chunked fori_loop body -------
    x_mid = jax.random.normal(k3, (1200, 1024), dtype=jnp.float32)
    got_mid = temporal_contrastive_loss(x_mid)
    jax.block_until_ready(got_mid)
    ref_mid = _reference_trimmed(x_mid)
    assert jnp.allclose(got_mid, ref_mid, rtol=5e-3, atol=5e-4), (got_mid, ref_mid)

    # --- forced tiled path (parallel per-tile partials), ragged last tile ---------------
    x_big = jax.random.normal(k4, (1000, 640), dtype=jnp.float32)
    got_big = temporal_contrastive_loss(x_big, tile_rows=256)
    jax.block_until_ready(got_big)
    ref_big = _reference_trimmed(x_big)
    assert jnp.allclose(got_big, ref_big, rtol=5e-3, atol=5e-4), (got_big, ref_big)

    # --- forced tiled path, evenly divisible tiles ---------------------------------------
    x_even = x_big[:768]
    got_even = temporal_contrastive_loss(x_even, tile_rows=256)
    jax.block_until_ready(got_even)
    ref_even = _reference_trimmed(x_even)
    assert jnp.allclose(got_even, ref_even, rtol=5e-3, atol=5e-4), (got_even, ref_even)

    print("KERNEL_OK")
</pallas_src>

<mosaic_0001>
module attributes {stable_mosaic.version = 11 : i64} {
  func.func @_tcl_single_kernel(%arg0: memref<8x16xf32, #tpu.memory_space<vmem>>, %arg1: memref<1x1xf32, #tpu.memory_space<vmem>>) attributes {dimension_semantics = [], scalar_prefetch = 0 : i64, scratch_operands = 0 : i64, tpu.core_type = #tpu.core_type<tc>} {
    %cst = arith.constant 0.000000e+00 : f32
    %0 = vector.broadcast %cst : f32 to vector<1x1xf32>
    %c0 = arith.constant 0 : index
    %c0_0 = arith.constant 0 : index
    %1 = vector.load %arg0[%c0, %c0_0] : memref<8x16xf32, #tpu.memory_space<vmem>>, vector<8x16xf32>
    %2 = vector.shape_cast %1 : vector<8x16xf32> to vector<1x8x16xf32>
    %cst_1 = arith.constant dense<0.000000e+00> : vector<1xf32>
    %3 = vector.multi_reduction <add>, %2, %cst_1 [1, 2] : vector<1x8x16xf32> to vector<1xf32>
    %4 = vector.shape_cast %3 : vector<1xf32> to vector<1x1x1xf32>
    %5 = vector.extract %4[0, 0, 0] : f32 from vector<1x1x1xf32>
    %6 = vector.broadcast %5 : f32 to vector<1x1xf32>
    %7 = arith.addf %0, %6 : vector<1x1xf32>
    %cst_2 = arith.constant 1.280000e+02 : f32
    %8 = vector.broadcast %cst_2 : f32 to vector<1x1xf32>
    %9 = arith.divf %7, %8 : vector<1x1xf32>
    %cst_3 = arith.constant 0.000000e+00 : f32
    %10 = vector.broadcast %cst_3 : f32 to vector<1x1xf32>
    %c0_4 = arith.constant 0 : index
    %c0_5 = arith.constant 0 : index
    %11 = vector.load %arg0[%c0_4, %c0_5] : memref<8x16xf32, #tpu.memory_space<vmem>>, vector<8x16xf32>
    %12 = vector.broadcast %9 : vector<1x1xf32> to vector<8x16xf32>
    %13 = arith.subf %11, %12 : vector<8x16xf32>
    %14 = arith.mulf %13, %13 : vector<8x16xf32>
    %15 = vector.shape_cast %14 : vector<8x16xf32> to vector<1x8x16xf32>
    %cst_6 = arith.constant dense<0.000000e+00> : vector<1xf32>
    %16 = vector.multi_reduction <add>, %15, %cst_6 [1, 2] : vector<1x8x16xf32> to vector<1xf32>
    %17 = vector.shape_cast %16 : vector<1xf32> to vector<1x1x1xf32>
    %18 = vector.extract %17[0, 0, 0] : f32 from vector<1x1x1xf32>
    %19 = vector.broadcast %18 : f32 to vector<1x1xf32>
    %20 = arith.addf %10, %19 : vector<1x1xf32>
    %cst_7 = arith.constant 1.270000e+02 : f32
    %21 = vector.broadcast %cst_7 : f32 to vector<1x1xf32>
    %22 = arith.divf %20, %21 : vector<1x1xf32>
    %cst_8 = arith.constant -5.000000e-01 : f32
    %23 = vector.broadcast %cst_8 : f32 to vector<1x1xf32>
    %24 = arith.divf %23, %22 : vector<1x1xf32>
    %cst_9 = arith.constant 0.000000e+00 : f32
    %25 = vector.broadcast %cst_9 : f32 to vector<1x1xf32>
    %c0_10 = arith.constant 0 : index
    %c0_11 = arith.constant 0 : index
    %26 = vector.load %arg0[%c0_10, %c0_11] : memref<8x16xf32, #tpu.memory_space<vmem>>, vector<8x16xf32>
    %27 = vector.broadcast %9 : vector<1x1xf32> to vector<8x16xf32>
    %28 = arith.subf %26, %27 : vector<8x16xf32>
    %29 = arith.mulf %28, %28 : vector<8x16xf32>
    %30 = vector.broadcast %24 : vector<1x1xf32> to vector<8x16xf32>
    %31 = arith.mulf %29, %30 : vector<8x16xf32>
    %32 = math.exp %31 : vector<8x16xf32>
    %33 = vector.shape_cast %32 : vector<8x16xf32> to vector<1x8x16xf32>
    %cst_12 = arith.constant dense<0.000000e+00> : vector<1xf32>
    %34 = vector.multi_reduction <add>, %33, %cst_12 [1, 2] : vector<1x8x16xf32> to vector<1xf32>
    %35 = vector.shape_cast %34 : vector<1xf32> to vector<1x1x1xf32>
    %36 = vector.extract %35[0, 0, 0] : f32 from vector<1x1x1xf32>
    %37 = vector.broadcast %36 : f32 to vector<1x1xf32>
    %38 = arith.addf %25, %37 : vector<1x1xf32>
    %cst_13 = arith.constant 1.000000e+00 : f32
    %39 = vector.broadcast %cst_13 : f32 to vector<1x1xf32>
    %40 = arith.divf %39, %38 : vector<1x1xf32>
    %c7 = arith.constant 7 : index
    %c0_14 = arith.constant 0 : index
    %41 = vector.load %arg0[%c7, %c0_14] : memref<8x16xf32, #tpu.memory_space<vmem>>, vector<1x16xf32>
    %42 = vector.broadcast %9 : vector<1x1xf32> to vector<1x16xf32>
    %43 = arith.subf %41, %42 : vector<1x16xf32>
    %44 = arith.mulf %43, %43 : vector<1x16xf32>
    %45 = vector.broadcast %24 : vector<1x1xf32> to vector<1x16xf32>
    %46 = arith.mulf %44, %45 : vector<1x16xf32>
    %47 = math.exp %46 : vector<1x16xf32>
    %48 = vector.broadcast %40 : vector<1x1xf32> to vector<1x16xf32>
    %49 = arith.mulf %47, %48 : vector<1x16xf32>
    %50 = math.log %49 : vector<1x16xf32>
    %51 = arith.mulf %49, %49 : vector<1x16xf32>
    %52 = arith.mulf %51, %50 : vector<1x16xf32>
    %53 = vector.shape_cast %52 : vector<1x16xf32> to vector<1x1x16xf32>
    %cst_15 = arith.constant dense<0.000000e+00> : vector<1xf32>
    %54 = vector.multi_reduction <add>, %53, %cst_15 [1, 2] : vector<1x1x16xf32> to vector<1xf32>
    %55 = vector.shape_cast %54 : vector<1xf32> to vector<1x1x1xf32>
    %56 = vector.extract %55[0, 0, 0] : f32 from vector<1x1x1xf32>
    %57 = vector.broadcast %56 : f32 to vector<1x1xf32>
    %cst_16 = arith.constant 7.000000e+00 : f32
    %58 = vector.broadcast %cst_16 : f32 to vector<1x1xf32>
    %59 = arith.mulf %58, %57 : vector<1x1xf32>
    %cst_17 = arith.constant 1.000000e+04 : f32
    %60 = vector.broadcast %cst_17 : f32 to vector<1x1xf32>
    %61 = arith.mulf %60, %59 : vector<1x1xf32>
    %62 = math.exp %61 : vector<1x1xf32>
    %cst_18 = arith.constant 1.000000e+00 : f32
    %63 = vector.broadcast %cst_18 : f32 to vector<1x1xf32>
    %64 = arith.addf %63, %62 : vector<1x1xf32>
    %65 = math.log %64 : vector<1x1xf32>
    %66 = arith.addf %59, %65 : vector<1x1xf32>
    %c0_19 = arith.constant 0 : index
    %c0_20 = arith.constant 0 : index
    %67 = vector.load %arg1[%c0_19, %c0_20] : memref<1x1xf32, #tpu.memory_space<vmem>>, vector<1x1xf32>
    tpu.vector_store %arg1[%c0_19, %c0_20], %66 {strides = array<i32>} : memref<1x1xf32, #tpu.memory_space<vmem>>, vector<1x1xf32>,
    return
  }
}

</mosaic_0001>

<bundles_post_ra>
// kernel: tpu_custom_call.1
= control target key start
LH: loop header
LB: loop body
LE: loop exit
PB: predicated region body
PF: predicated region fallthrough
CT: control target
= control target key end

     0   :  { %6 = vsyncpa [#allocation3], 0  ;;  %s209_s0 = inlined_call_operand.hbm [shape: f32[8,16], index: 0, kind: input, shape index: {}]   ;;  %s210_s1 = inlined_call_operand.hbm [shape: f32[1,1], index: 1, kind: output, shape index: {}]  }
   0x1   :  { %7 = vsyncpa [#allocation4], 0  ;;  %s188_s6 = smov [#allocation2]  }
   0x2   :  { %s14_s7 = sshll.u32 %s188_s6, 4  ;;  %s15_s7 = int_to_ptr.vmem [resolvable:$true] %s14_s7 }
   0x3   :  { %s152_s8 = scalar_lea.vmem %s15_s7, 128  ;;  %p157_p1 = scmp.lt.s32.totalorder %s15_s7, %s15_s7 }
   0x4   :  { %p153_p0 = scmp.ne.s32.totalorder %s15_s7, %s152_s8  ;;  %p158_p2 = scmp.lt.s32.totalorder %s152_s8, %s152_s8 }
   0x6   :  { %p159_p3 = por %p158_p2, %p157_p1 }
   0x8   :  { %p160_p4 = pnand %p159_p3, %p153_p0 }
   0xa   :  { %163 = shalt.err (!%p160_p4)
}
   0xb   :  { %17 = dma.hbm_to_vmem [thread:$0]  %s209_s0, 128, %s15_s7, [#allocation3]  }
   0xc   :  { %184 = dma.done.wait [#allocation3], 128  }
   0xd   :  { %185 = vsyncadd [#allocation3], 4294967168  ;;  %vm22_vm0 = vcmask 130048   ;;  %v21_v0 = vld [vmem:[#allocation2] sm:$0xff]  ;;  %vm83_vm1 = vcmask 122880   ;;  %s189_s14 = smov [#allocation5]  }
   0xe   :  { %v23_v1 = vsel %vm22_vm0, %v21_v0, 0.0  ;;  %v72_v23 = vld [vmem:[#allocation2 + $0x7] sm:$0x1]  ;;  %s111_s15 = sshll.u32 %s189_s14, 4  ;;  %vm103_vm2 = vcmask 0   ;;  %s112_s15 = int_to_ptr.vmem [resolvable:$true] %s111_s15 }
   0xf   :  { %24 = vadd.xlane.f32.xlu0 %v23_v1  ;;  %s164_s16 = scalar_lea.vmem %s112_s15, 16  ;;  %s168_s17 = scalar_lea.vmem %s112_s15, 32 }
  0x10   :  { %p165_p5 = scmp.ne.s32.totalorder %s112_s15, %s164_s16  ;;  %p169_p6 = scmp.lt.s32.totalorder %s112_s15, %s112_s15 }
  0x11   :  { %p170_p7 = scmp.lt.s32.totalorder %s168_s17, %s164_s16 }
  0x13   :  { %p171_p8 = por %p170_p7, %p169_p6 }
  0x15   :  { %p172_p9 = pnand %p171_p8, %p165_p5 }
  0x98   :  { %v25_v2 = vpop.xlane.xlu0 %24 }
  0x99   :  { %v26_v3 = vrot.slane %v25_v2, 4 }
  0x9b   :  { %v27_v4 = vadd.f32 %v26_v3, %v25_v2 }
  0x9d   :  { %v28_v5 = vrot.slane %v27_v4, 2 }
  0x9f   :  { %v29_v6 = vadd.f32 %v28_v5, %v27_v4 }
  0xa1   :  { %v30_v7 = vrot.slane %v29_v6, 1 }
  0xa3   :  { %v31_v8 = vadd.f32 %v30_v7, %v29_v6 }
  0xa5   :  { %120 = vpush %v31_v8 }
  0xd6   :  { %s121_s11 = spop %120 }
  0xd7   :  { %v33_v9 = vstv %s121_s11 }
  0xd8   :  { %v36_v10 = vmul.f32 0.0078125, %v33_v9 }
  0xda   :  { %v37_v11 = vsub.f32 %v21_v0, %v36_v10  ;;  %v73_v24 = vsub.f32 %v72_v23, %v36_v10 }
  0xdc   :  { %v38_v12 = vmul.f32 %v37_v11, %v37_v11  ;;  %v74_v26 = vmul.f32 %v73_v24, %v73_v24 }
  0xde   :  { %v39_v13 = vsel %vm22_vm0, %v38_v12, 0.0 }
  0xdf   :  { %40 = vadd.xlane.f32.xlu0 %v39_v13 }
 0x168   :  { %v41_v14 = vpop.xlane.xlu0 %40 }
 0x169   :  { %v42_v15 = vrot.slane %v41_v14, 4 }
 0x16b   :  { %v43_v16 = vadd.f32 %v42_v15, %v41_v14 }
 0x16d   :  { %v44_v17 = vrot.slane %v43_v16, 2 }
 0x16f   :  { %v45_v18 = vadd.f32 %v44_v17, %v43_v16 }
 0x171   :  { %v46_v19 = vrot.slane %v45_v18, 1 }
 0x173   :  { %v47_v20 = vadd.f32 %v46_v19, %v45_v18 }
 0x175   :  { %122 = vpush %v47_v20 }
 0x1a6   :  { %s123_s0 = spop %122 }
 0x1a7   :  { %v49_v21 = vstv %s123_s0 }
 0x1a8   :  { %v52_v22 = vmul.f32 0.007874016, %v49_v21 }
 0x1aa   :  { %130 = vrcp.f32 %v52_v22 }
 0x1b7   :  { %v131_v25 = vpop.eup %130 }
 0x1b8   :  { %v54_v27 = vmul.f32 -0.5, %v131_v25 }
 0x1ba   :  { %v55_v28 = vmul.f32 %v54_v27, %v38_v12  ;;  %v75_v29 = vmul.f32 %v74_v26, %v54_v27 }
 0x1bc   :  { %v56_v30 = vmul.f32 1.442695, %v55_v28  ;;  %v76_v40 = vmul.f32 1.442695, %v75_v29 }
 0x1be   :  { %132 = vpow2.f32 %v56_v30 }
 0x1bf   :  { %134 = vpow2.f32 %v76_v40 }
 0x1cb   :  { %v133_v31 = vpop.eup %132 }
 0x1cc   :  { %v58_v32 = vsel %vm22_vm0, %v133_v31, 0.0  ;;  %v135_v42 = vpop.eup %134 }
 0x1cd   :  { %59 = vadd.xlane.f32.xlu1 %v58_v32 }
 0x256   :  { %v60_v33 = vpop.xlane.xlu1 %59 }
 0x257   :  { %v61_v34 = vrot.slane %v60_v33, 4 }
 0x259   :  { %v62_v35 = vadd.f32 %v61_v34, %v60_v33 }
 0x25b   :  { %v63_v36 = vrot.slane %v62_v35, 2 }
 0x25d   :  { %v64_v37 = vadd.f32 %v63_v36, %v62_v35 }
 0x25f   :  { %v65_v38 = vrot.slane %v64_v37, 1 }
 0x261   :  { %v66_v39 = vadd.f32 %v65_v38, %v64_v37 }
 0x263   :  { %124 = vpush %v66_v39 }
 0x294   :  { %s125_s12 = spop %124 }
 0x295   :  { %v68_v41 = vstv %s125_s12 }
 0x296   :  { %136 = vrcp.f32 %v68_v41 }
 0x2a3   :  { %v137_v43 = vpop.eup %136 }
 0x2a4   :  { %v78_v44 = vmul.f32 %v137_v43, %v135_v42 }
 0x2a6   :  { %138 = vlog2.f32 %v78_v44  ;;  %v81_v47 = vmul.f32 %v78_v44, %v78_v44 }
 0x2b3   :  { %v139_v45 = vpop.eup %138 }
 0x2b4   :  { %v80_v46 = vmul.f32 0.6931472, %v139_v45 }
 0x2b6   :  { %v82_v48 = vmul.f32 %v81_v47, %v80_v46 }
 0x2b8   :  { %v84_v49 = vsel %vm83_vm1, %v82_v48, 0.0 }
 0x2b9   :  { %85 = vadd.xlane.f32.xlu1 %v84_v49 }
 0x342   :  { %v86_v50 = vpop.xlane.xlu1 %85 }
 0x343   :  { %v87_v51 = vrot.slane %v86_v50, 4 }
 0x345   :  { %v88_v52 = vadd.f32 %v87_v51, %v86_v50 }
 0x347   :  { %v89_v53 = vrot.slane %v88_v52, 2 }
 0x349   :  { %v90_v54 = vadd.f32 %v89_v53, %v88_v52 }
 0x34b   :  { %v91_v55 = vrot.slane %v90_v54, 1 }
 0x34d   :  { %v92_v56 = vadd.f32 %v91_v55, %v90_v54 }
 0x34f   :  { %126 = vpush %v92_v56 }
 0x380   :  { %s127_s13 = spop %126 }
 0x381   :  { %v94_v57 = vstv %s127_s13 }
 0x382   :  { %v95_v58 = vmul.f32 7.0, %v94_v57 }
 0x384   :  { %v96_v59 = vmul.f32 10000.0, %v95_v58 }
 0x386   :  { %v97_v60 = vmul.f32 1.442695, %v96_v59 }
 0x388   :  { %140 = vpow2.f32 %v97_v60 }
 0x395   :  { %v141_v61 = vpop.eup %140 }
 0x396   :  { %v99_v62 = vadd.f32 1.0, %v141_v61 }
 0x398   :  { %142 = vlog2.f32 %v99_v62 }
 0x3a5   :  { %v143_v63 = vpop.eup %142 }
 0x3a6   :  { %v101_v0 = vmul.f32 0.6931472, %v143_v63 }
 0x3a8   :  { %v102_v1 = vadd.f32 %v101_v0, %v95_v58 }
 0x3aa   :  { %104 = vst.msk [vmem:[#allocation5] sm:$0x1] %vm103_vm2, %v102_v1 }
 0x3ab   :  { %175 = shalt.err (!%p172_p9)
}
 0x3ac   :  { %114 = dma.vmem_to_hbm [thread:$0]  %s112_s15, 16, %s210_s1, [#allocation4]  }
 0x3ad   :  { %186 = dma.done.wait [#allocation4], 16  }
 0x3ae   :  { %187 = vsyncadd [#allocation4], 4294967280 }
 0x3af   :  { %118 = vsyncpa [#allocation3], 1 }
 0x3b0   :  { %119 = vsyncpa [#allocation4], 1 }

</bundles_post_ra>
